<compile_context>
chip_gen: v7x
topology: tpu7x:2x2x1
jax: 0.10.0
libtpu: 0.0.40
codegen_flags: <defaults>
</compile_context>

<pallas_src>
import functools

import numpy as np
import jax
import jax.numpy as jnp
from jax.experimental import pallas as pl
from jax.experimental.pallas import tpu as pltpu


def _distill_loss2_kernel(s0_ref, s1_ref, t0_ref, t1_ref, n0_ref, n1_ref,
                          out_ref, acc_ref, *,
                          inv_student_temp, inv_teacher_temp,
                          num_near, rows_per_half):
    """Per grid step: one matched row tile from each half of every stream.

    s0_ref/s1_ref: VMEM (TM, D)  student logits, half 0 / half 1
    t0_ref/t1_ref: VMEM (TM, D)  teacher logits, half 0 / half 1
    n0_ref/n1_ref: VMEM (L, TM, D) "near" logits, half 0 / half 1
    out_ref:       SMEM (1, 1)   scalar loss (written on the last step)
    acc_ref:       SMEM (2,)     running sums: [cross term, near term]
    """
    @pl.when(pl.program_id(0) == 0)
    def _init():
        acc_ref[0] = jnp.float32(0.0)
        acc_ref[1] = jnp.float32(0.0)

    inv_s = jnp.float32(inv_student_temp)
    inv_t = jnp.float32(inv_teacher_temp)

    def log_softmax(x):
        m = jnp.max(x, axis=-1, keepdims=True)
        xs = x - m
        lse = jnp.log(jnp.sum(jnp.exp(xs), axis=-1, keepdims=True))
        return xs - lse

    # Student log-softmax per half: computed ONCE per tile, reused for the
    # teacher cross term and every near term.
    lp0 = log_softmax(s0_ref[...].astype(jnp.float32) * inv_s)   # (TM, D)
    lp1 = log_softmax(s1_ref[...].astype(jnp.float32) * inv_s)   # (TM, D)

    def ce_rowsum(logits, logp):
        # sum_rows sum_cols( softmax(logits) * (-logp) ) with the softmax
        # normalization folded into the row reduction: only a per-row (TM,1)
        # reciprocal instead of a full-width (TM,D) divide + temporary.
        m = jnp.max(logits, axis=-1, keepdims=True)
        e = jnp.exp(logits - m)
        num = jnp.sum(e * (-logp), axis=-1, keepdims=True)        # (TM, 1)
        den = jnp.sum(e, axis=-1, keepdims=True)                  # (TM, 1)
        # approx=False keeps the f32 reference tolerance tight; switch to
        # approx=True (EUP vrcp) if ~1e-3 relative error is acceptable.
        return jnp.sum(num * pl.reciprocal(den, approx=False))

    # Cross term: teacher half 0 vs student half 1, and vice versa (v != iq).
    cross = ce_rowsum(t0_ref[...].astype(jnp.float32) * inv_t, lp1)
    cross = cross + ce_rowsum(t1_ref[...].astype(jnp.float32) * inv_t, lp0)

    # Near term: softmax(near_l / student_temp) vs log_softmax of the FULL
    # student_out (both halves).  num_near is tiny -> static unroll.
    near = jnp.float32(0.0)
    for l in range(num_near):
        near = near + ce_rowsum(n0_ref[l].astype(jnp.float32) * inv_s, lp0)
        near = near + ce_rowsum(n1_ref[l].astype(jnp.float32) * inv_s, lp1)

    acc_ref[0] = acc_ref[0] + cross
    acc_ref[1] = acc_ref[1] + near

    @pl.when(pl.program_id(0) == pl.num_programs(0) - 1)
    def _finalize():
        # cross: two loss terms, each a mean over rows_per_half rows, then /2
        total_cross = acc_ref[0] / jnp.float32(2 * rows_per_half)
        # near: num_near terms, each a mean over 2*rows_per_half rows, then /L
        total_near = acc_ref[1] / jnp.float32(2 * rows_per_half * num_near)
        out_ref[0, 0] = (total_cross + total_near) * jnp.float32(0.5)


def _pick_row_tile(rows_per_half, classes, num_near, itemsizes, sublane,
                   buffer_budget_bytes=8 * 1024 * 1024):
    """Largest row tile that is a multiple of the sublane packing, divides the
    per-half row count, and keeps the double-buffered input tiles under budget
    (leaves headroom for f32 compute temporaries even on v7x's 64 MiB VMEM)."""
    s_it, t_it, n_it = itemsizes
    bytes_per_row = classes * (2 * s_it + 2 * t_it + 2 * num_near * n_it)
    best = None
    tm = sublane
    while tm <= rows_per_half:
        if rows_per_half % tm == 0 and 2 * tm * bytes_per_row <= buffer_budget_bytes:
            best = tm
        tm += sublane
    if best is None:
        best = sublane   # smallest legal tile (budget soft-violated)
    return best


def _distill_loss2_forward(student, teacher, near, student_temp, teacher_temp):
    rows, classes = student.shape
    assert teacher.shape == (rows, classes)
    num_near = near.shape[0]
    assert near.shape == (num_near, rows, classes)
    assert rows % 2 == 0, "expects the 2 crops stacked along the row axis"
    half = rows // 2

    itemsizes = tuple(jnp.dtype(a.dtype).itemsize for a in (student, teacher, near))
    sublane = 16 if min(itemsizes) == 2 else 8        # bf16 packs 16 rows / vreg
    if half % sublane != 0:
        raise ValueError(
            f"rows per crop ({half}) must be a multiple of {sublane} for the tiled kernel")

    tm = _pick_row_tile(half, classes, num_near, itemsizes, sublane)
    nb = half // tm                                   # grid size (row tiles per half)

    kernel = functools.partial(
        _distill_loss2_kernel,
        inv_student_temp=float(1.0 / student_temp),
        inv_teacher_temp=float(1.0 / teacher_temp),
        num_near=num_near,
        rows_per_half=half,
    )

    grid_spec = pltpu.PrefetchScalarGridSpec(
        num_scalar_prefetch=0,
        grid=(nb,),
        in_specs=[
            pl.BlockSpec((tm, classes), lambda i: (i, 0)),                    # student half 0
            pl.BlockSpec((tm, classes), lambda i: (i + nb, 0)),               # student half 1
            pl.BlockSpec((tm, classes), lambda i: (i, 0)),                    # teacher half 0
            pl.BlockSpec((tm, classes), lambda i: (i + nb, 0)),               # teacher half 1
            pl.BlockSpec((num_near, tm, classes), lambda i: (0, i, 0)),       # near half 0
            pl.BlockSpec((num_near, tm, classes), lambda i: (0, i + nb, 0)),  # near half 1
        ],
        out_specs=pl.BlockSpec(memory_space=pltpu.MemorySpace.SMEM),
        scratch_shapes=[pltpu.SMEM((2,), jnp.float32)],
    )

    total_elems = (2 + num_near) * rows * classes
    cost = pl.CostEstimate(
        flops=10 * total_elems,
        transcendentals=total_elems,
        bytes_accessed=int(student.nbytes) + int(teacher.nbytes) + int(near.nbytes) + 4,
    )

    out = pl.pallas_call(
        kernel,
        out_shape=jax.ShapeDtypeStruct((1, 1), jnp.float32),
        grid_spec=grid_spec,
        compiler_params=pltpu.CompilerParams(
            dimension_semantics=("arbitrary",),       # reduction into one scalar
            vmem_limit_bytes=48 * 1024 * 1024,        # fits v7x (64 MiB physical)
        ),
        cost_estimate=cost,
    )(student, student, teacher, teacher, near, near)
    return out[0, 0]


class DistillLoss2:
    """JAX/Pallas port of the PyTorch DistillLoss2 module (forward only)."""

    # TODO(synk): generalize to ncrops > 2 (kernel specializes the module default ncrops=2).
    def __init__(self, warmup_teacher_temp_epochs, nepochs, ncrops=2,
                 warmup_teacher_temp=0.07, teacher_temp=0.04, student_temp=0.1):
        assert ncrops == 2, "kernel specializes the default ncrops=2"
        self.student_temp = student_temp
        self.ncrops = ncrops
        self.teacher_temp_schedule = np.concatenate((
            np.linspace(warmup_teacher_temp, teacher_temp, warmup_teacher_temp_epochs),
            np.ones(nepochs - warmup_teacher_temp_epochs) * teacher_temp))

    def __call__(self, student_output, teacher_output, near_output, epoch):
        student = jnp.asarray(student_output)
        teacher = jnp.asarray(teacher_output)
        near = jnp.stack([jnp.asarray(x) for x in near_output], axis=0)  # [L, 2B, D]
        teacher_temp = float(self.teacher_temp_schedule[int(epoch)])     # host-side lookup
        return _distill_loss2_forward(student, teacher, near,
                                      self.student_temp, teacher_temp)


def _reference(student_output, teacher_output, near_list, student_temp, teacher_temp):
    s = student_output / student_temp
    logp_s = jax.nn.log_softmax(s, axis=-1)
    q = jax.nn.softmax(teacher_output / teacher_temp, axis=-1)
    half = s.shape[0] // 2
    l01 = jnp.mean(jnp.sum(-q[:half] * logp_s[half:], axis=-1))
    l10 = jnp.mean(jnp.sum(-q[half:] * logp_s[:half], axis=-1))
    total = (l01 + l10) / 2.0
    near_acc = 0.0
    for nl in near_list:
        p = jax.nn.softmax(nl / student_temp, axis=-1)
        near_acc = near_acc + jnp.mean(jnp.sum(-p * logp_s, axis=-1))
    total_near = near_acc / len(near_list)
    return (total + total_near) / 2.0


if __name__ == "__main__":
    key = jax.random.PRNGKey(0)
    k1, k2, k3, k4 = jax.random.split(key, 4)

    B, D, L = 8, 128, 2          # batch per crop, num classes, num "near" outputs
    ncrops = 2
    student = jax.random.normal(k1, (ncrops * B, D), jnp.float32)
    teacher = jax.random.normal(k2, (2 * B, D), jnp.float32)
    near = [jax.random.normal(k3, (ncrops * B, D), jnp.float32),
            jax.random.normal(k4, (ncrops * B, D), jnp.float32)]

    loss_fn = DistillLoss2(warmup_teacher_temp_epochs=5, nepochs=10)
    epoch = 3

    out = jax.block_until_ready(loss_fn(student, teacher, near, epoch))

    ref = _reference(student, teacher, near, loss_fn.student_temp,
                     float(loss_fn.teacher_temp_schedule[epoch]))
    assert jnp.allclose(out, ref, rtol=1e-5, atol=1e-5), (out, ref)
    print("KERNEL_OK")
</pallas_src>

<mosaic_0001>
module attributes {stable_mosaic.version = 11 : i64} {
  func.func @_distill_loss2_kernel(%arg0: i32, %arg1: memref<8x128xf32, #tpu.memory_space<vmem>>, %arg2: memref<8x128xf32, #tpu.memory_space<vmem>>, %arg3: memref<8x128xf32, #tpu.memory_space<vmem>>, %arg4: memref<8x128xf32, #tpu.memory_space<vmem>>, %arg5: memref<2x8x128xf32, #tpu.memory_space<vmem>>, %arg6: memref<2x8x128xf32, #tpu.memory_space<vmem>>, %arg7: memref<1x1xf32, #tpu.memory_space<smem>>, %arg8: memref<2xf32, #tpu.memory_space<smem>>) attributes {dimension_semantics = [#tpu.dimension_semantics<arbitrary>], iteration_bounds = array<i64: 1>, scalar_prefetch = 0 : i64, scratch_operands = 1 : i64, tpu.core_type = #tpu.core_type<tc>, window_params = [{transform_indices = @transform_0, window_bounds = array<i64: 8, 128>}, {transform_indices = @transform_1, window_bounds = array<i64: 8, 128>}, {transform_indices = @transform_2, window_bounds = array<i64: 8, 128>}, {transform_indices = @transform_3, window_bounds = array<i64: 8, 128>}, {transform_indices = @transform_4, window_bounds = array<i64: 2, 8, 128>}, {transform_indices = @transform_5, window_bounds = array<i64: 2, 8, 128>}, {transform_indices = @transform_6, window_bounds = array<i64: 1, 1>}]} {
    %c0_i32 = arith.constant 0 : i32
    %0 = arith.cmpi eq, %arg0, %c0_i32 : i32
    %1 = arith.extui %0 : i1 to i32
    %c0_i32_0 = arith.constant 0 : i32
    %2 = arith.cmpi ne, %1, %c0_i32_0 : i32
    scf.if %2 {
      %cst_67 = arith.constant 0.000000e+00 : f32
      %c0_68 = arith.constant 0 : index
      %173 = memref.load %arg8[%c0_68] : memref<2xf32, #tpu.memory_space<smem>>
      memref.store %cst_67, %arg8[%c0_68] : memref<2xf32, #tpu.memory_space<smem>>
      %cst_69 = arith.constant 0.000000e+00 : f32
      %c1_70 = arith.constant 1 : index
      %174 = memref.load %arg8[%c1_70] : memref<2xf32, #tpu.memory_space<smem>>
      memref.store %cst_69, %arg8[%c1_70] : memref<2xf32, #tpu.memory_space<smem>>
    } else {
    }
    %c0 = arith.constant 0 : index
    %c0_1 = arith.constant 0 : index
    %3 = vector.load %arg1[%c0, %c0_1] : memref<8x128xf32, #tpu.memory_space<vmem>>, vector<8x128xf32>
    %cst = arith.constant 1.000000e+01 : f32
    %4 = vector.broadcast %cst : f32 to vector<8x128xf32>
    %5 = arith.mulf %3, %4 : vector<8x128xf32>
    %cst_2 = arith.constant dense<0xFF800000> : vector<8xf32>
    %6 = vector.multi_reduction <maximumf>, %5, %cst_2 [1] : vector<8x128xf32> to vector<8xf32>
    %7 = vector.shape_cast %6 : vector<8xf32> to vector<8x1xf32>
    %8 = vector.broadcast %7 : vector<8x1xf32> to vector<8x128xf32>
    %9 = arith.subf %5, %8 : vector<8x128xf32>
    %10 = math.exp %9 : vector<8x128xf32>
    %cst_3 = arith.constant dense<0.000000e+00> : vector<8xf32>
    %11 = vector.multi_reduction <add>, %10, %cst_3 [1] : vector<8x128xf32> to vector<8xf32>
    %12 = vector.shape_cast %11 : vector<8xf32> to vector<8x1xf32>
    %13 = math.log %12 : vector<8x1xf32>
    %14 = vector.broadcast %13 : vector<8x1xf32> to vector<8x128xf32>
    %15 = arith.subf %9, %14 : vector<8x128xf32>
    %c0_4 = arith.constant 0 : index
    %c0_5 = arith.constant 0 : index
    %16 = vector.load %arg2[%c0_4, %c0_5] : memref<8x128xf32, #tpu.memory_space<vmem>>, vector<8x128xf32>
    %cst_6 = arith.constant 1.000000e+01 : f32
    %17 = vector.broadcast %cst_6 : f32 to vector<8x128xf32>
    %18 = arith.mulf %16, %17 : vector<8x128xf32>
    %cst_7 = arith.constant dense<0xFF800000> : vector<8xf32>
    %19 = vector.multi_reduction <maximumf>, %18, %cst_7 [1] : vector<8x128xf32> to vector<8xf32>
    %20 = vector.shape_cast %19 : vector<8xf32> to vector<8x1xf32>
    %21 = vector.broadcast %20 : vector<8x1xf32> to vector<8x128xf32>
    %22 = arith.subf %18, %21 : vector<8x128xf32>
    %23 = math.exp %22 : vector<8x128xf32>
    %cst_8 = arith.constant dense<0.000000e+00> : vector<8xf32>
    %24 = vector.multi_reduction <add>, %23, %cst_8 [1] : vector<8x128xf32> to vector<8xf32>
    %25 = vector.shape_cast %24 : vector<8xf32> to vector<8x1xf32>
    %26 = math.log %25 : vector<8x1xf32>
    %27 = vector.broadcast %26 : vector<8x1xf32> to vector<8x128xf32>
    %28 = arith.subf %22, %27 : vector<8x128xf32>
    %c0_9 = arith.constant 0 : index
    %c0_10 = arith.constant 0 : index
    %29 = vector.load %arg3[%c0_9, %c0_10] : memref<8x128xf32, #tpu.memory_space<vmem>>, vector<8x128xf32>
    %cst_11 = arith.constant 21.0526314 : f32
    %30 = vector.broadcast %cst_11 : f32 to vector<8x128xf32>
    %31 = arith.mulf %29, %30 : vector<8x128xf32>
    %cst_12 = arith.constant dense<0xFF800000> : vector<8xf32>
    %32 = vector.multi_reduction <maximumf>, %31, %cst_12 [1] : vector<8x128xf32> to vector<8xf32>
    %33 = vector.shape_cast %32 : vector<8xf32> to vector<8x1xf32>
    %34 = vector.broadcast %33 : vector<8x1xf32> to vector<8x128xf32>
    %35 = arith.subf %31, %34 : vector<8x128xf32>
    %36 = math.exp %35 : vector<8x128xf32>
    %cst_13 = arith.constant 0.000000e+00 : f32
    %37 = vector.broadcast %cst_13 : f32 to vector<8x128xf32>
    %38 = arith.subf %37, %28 : vector<8x128xf32>
    %39 = arith.mulf %36, %38 : vector<8x128xf32>
    %cst_14 = arith.constant dense<0.000000e+00> : vector<8xf32>
    %40 = vector.multi_reduction <add>, %39, %cst_14 [1] : vector<8x128xf32> to vector<8xf32>
    %41 = vector.shape_cast %40 : vector<8xf32> to vector<8x1xf32>
    %cst_15 = arith.constant dense<0.000000e+00> : vector<8xf32>
    %42 = vector.multi_reduction <add>, %36, %cst_15 [1] : vector<8x128xf32> to vector<8xf32>
    %43 = vector.shape_cast %42 : vector<8xf32> to vector<8x1xf32>
    %44 = tpu.reciprocal %43 : vector<8x1xf32> -> vector<8x1xf32>
    %45 = arith.mulf %41, %44 : vector<8x1xf32>
    %46 = vector.shape_cast %45 : vector<8x1xf32> to vector<1x8x1xf32>
    %cst_16 = arith.constant dense<0.000000e+00> : vector<1xf32>
    %47 = vector.multi_reduction <add>, %46, %cst_16 [1, 2] : vector<1x8x1xf32> to vector<1xf32>
    %48 = vector.shape_cast %47 : vector<1xf32> to vector<1x1x1xf32>
    %49 = vector.extract %48[0, 0, 0] : f32 from vector<1x1x1xf32>
    %c0_17 = arith.constant 0 : index
    %c0_18 = arith.constant 0 : index
    %50 = vector.load %arg4[%c0_17, %c0_18] : memref<8x128xf32, #tpu.memory_space<vmem>>, vector<8x128xf32>
    %cst_19 = arith.constant 21.0526314 : f32
    %51 = vector.broadcast %cst_19 : f32 to vector<8x128xf32>
    %52 = arith.mulf %50, %51 : vector<8x128xf32>
    %cst_20 = arith.constant dense<0xFF800000> : vector<8xf32>
    %53 = vector.multi_reduction <maximumf>, %52, %cst_20 [1] : vector<8x128xf32> to vector<8xf32>
    %54 = vector.shape_cast %53 : vector<8xf32> to vector<8x1xf32>
    %55 = vector.broadcast %54 : vector<8x1xf32> to vector<8x128xf32>
    %56 = arith.subf %52, %55 : vector<8x128xf32>
    %57 = math.exp %56 : vector<8x128xf32>
    %cst_21 = arith.constant 0.000000e+00 : f32
    %58 = vector.broadcast %cst_21 : f32 to vector<8x128xf32>
    %59 = arith.subf %58, %15 : vector<8x128xf32>
    %60 = arith.mulf %57, %59 : vector<8x128xf32>
    %cst_22 = arith.constant dense<0.000000e+00> : vector<8xf32>
    %61 = vector.multi_reduction <add>, %60, %cst_22 [1] : vector<8x128xf32> to vector<8xf32>
    %62 = vector.shape_cast %61 : vector<8xf32> to vector<8x1xf32>
    %cst_23 = arith.constant dense<0.000000e+00> : vector<8xf32>
    %63 = vector.multi_reduction <add>, %57, %cst_23 [1] : vector<8x128xf32> to vector<8xf32>
    %64 = vector.shape_cast %63 : vector<8xf32> to vector<8x1xf32>
    %65 = tpu.reciprocal %64 : vector<8x1xf32> -> vector<8x1xf32>
    %66 = arith.mulf %62, %65 : vector<8x1xf32>
    %67 = vector.shape_cast %66 : vector<8x1xf32> to vector<1x8x1xf32>
    %cst_24 = arith.constant dense<0.000000e+00> : vector<1xf32>
    %68 = vector.multi_reduction <add>, %67, %cst_24 [1, 2] : vector<1x8x1xf32> to vector<1xf32>
    %69 = vector.shape_cast %68 : vector<1xf32> to vector<1x1x1xf32>
    %70 = vector.extract %69[0, 0, 0] : f32 from vector<1x1x1xf32>
    %71 = arith.addf %49, %70 : f32
    %c0_25 = arith.constant 0 : index
    %c0_26 = arith.constant 0 : index
    %c0_27 = arith.constant 0 : index
    %72 = vector.load %arg5[%c0_25, %c0_26, %c0_27] : memref<2x8x128xf32, #tpu.memory_space<vmem>>, vector<1x8x128xf32>
    %73 = vector.shape_cast %72 : vector<1x8x128xf32> to vector<8x128xf32>
    %cst_28 = arith.constant 1.000000e+01 : f32
    %74 = vector.broadcast %cst_28 : f32 to vector<8x128xf32>
    %75 = arith.mulf %73, %74 : vector<8x128xf32>
    %cst_29 = arith.constant dense<0xFF800000> : vector<8xf32>
    %76 = vector.multi_reduction <maximumf>, %75, %cst_29 [1] : vector<8x128xf32> to vector<8xf32>
    %77 = vector.shape_cast %76 : vector<8xf32> to vector<8x1xf32>
    %78 = vector.broadcast %77 : vector<8x1xf32> to vector<8x128xf32>
    %79 = arith.subf %75, %78 : vector<8x128xf32>
    %80 = math.exp %79 : vector<8x128xf32>
    %cst_30 = arith.constant 0.000000e+00 : f32
    %81 = vector.broadcast %cst_30 : f32 to vector<8x128xf32>
    %82 = arith.subf %81, %15 : vector<8x128xf32>
    %83 = arith.mulf %80, %82 : vector<8x128xf32>
    %cst_31 = arith.constant dense<0.000000e+00> : vector<8xf32>
    %84 = vector.multi_reduction <add>, %83, %cst_31 [1] : vector<8x128xf32> to vector<8xf32>
    %85 = vector.shape_cast %84 : vector<8xf32> to vector<8x1xf32>
    %cst_32 = arith.constant dense<0.000000e+00> : vector<8xf32>
    %86 = vector.multi_reduction <add>, %80, %cst_32 [1] : vector<8x128xf32> to vector<8xf32>
    %87 = vector.shape_cast %86 : vector<8xf32> to vector<8x1xf32>
    %88 = tpu.reciprocal %87 : vector<8x1xf32> -> vector<8x1xf32>
    %89 = arith.mulf %85, %88 : vector<8x1xf32>
    %90 = vector.shape_cast %89 : vector<8x1xf32> to vector<1x8x1xf32>
    %cst_33 = arith.constant dense<0.000000e+00> : vector<1xf32>
    %91 = vector.multi_reduction <add>, %90, %cst_33 [1, 2] : vector<1x8x1xf32> to vector<1xf32>
    %92 = vector.shape_cast %91 : vector<1xf32> to vector<1x1x1xf32>
    %93 = vector.extract %92[0, 0, 0] : f32 from vector<1x1x1xf32>
    %cst_34 = arith.constant 0.000000e+00 : f32
    %94 = arith.addf %cst_34, %93 : f32
    %c0_35 = arith.constant 0 : index
    %c0_36 = arith.constant 0 : index
    %c0_37 = arith.constant 0 : index
    %95 = vector.load %arg6[%c0_35, %c0_36, %c0_37] : memref<2x8x128xf32, #tpu.memory_space<vmem>>, vector<1x8x128xf32>
    %96 = vector.shape_cast %95 : vector<1x8x128xf32> to vector<8x128xf32>
    %cst_38 = arith.constant 1.000000e+01 : f32
    %97 = vector.broadcast %cst_38 : f32 to vector<8x128xf32>
    %98 = arith.mulf %96, %97 : vector<8x128xf32>
    %cst_39 = arith.constant dense<0xFF800000> : vector<8xf32>
    %99 = vector.multi_reduction <maximumf>, %98, %cst_39 [1] : vector<8x128xf32> to vector<8xf32>
    %100 = vector.shape_cast %99 : vector<8xf32> to vector<8x1xf32>
    %101 = vector.broadcast %100 : vector<8x1xf32> to vector<8x128xf32>
    %102 = arith.subf %98, %101 : vector<8x128xf32>
    %103 = math.exp %102 : vector<8x128xf32>
    %cst_40 = arith.constant 0.000000e+00 : f32
    %104 = vector.broadcast %cst_40 : f32 to vector<8x128xf32>
    %105 = arith.subf %104, %28 : vector<8x128xf32>
    %106 = arith.mulf %103, %105 : vector<8x128xf32>
    %cst_41 = arith.constant dense<0.000000e+00> : vector<8xf32>
    %107 = vector.multi_reduction <add>, %106, %cst_41 [1] : vector<8x128xf32> to vector<8xf32>
    %108 = vector.shape_cast %107 : vector<8xf32> to vector<8x1xf32>
    %cst_42 = arith.constant dense<0.000000e+00> : vector<8xf32>
    %109 = vector.multi_reduction <add>, %103, %cst_42 [1] : vector<8x128xf32> to vector<8xf32>
    %110 = vector.shape_cast %109 : vector<8xf32> to vector<8x1xf32>
    %111 = tpu.reciprocal %110 : vector<8x1xf32> -> vector<8x1xf32>
    %112 = arith.mulf %108, %111 : vector<8x1xf32>
    %113 = vector.shape_cast %112 : vector<8x1xf32> to vector<1x8x1xf32>
    %cst_43 = arith.constant dense<0.000000e+00> : vector<1xf32>
    %114 = vector.multi_reduction <add>, %113, %cst_43 [1, 2] : vector<1x8x1xf32> to vector<1xf32>
    %115 = vector.shape_cast %114 : vector<1xf32> to vector<1x1x1xf32>
    %116 = vector.extract %115[0, 0, 0] : f32 from vector<1x1x1xf32>
    %117 = arith.addf %94, %116 : f32
    %c1 = arith.constant 1 : index
    %c0_44 = arith.constant 0 : index
    %c0_45 = arith.constant 0 : index
    %118 = vector.load %arg5[%c1, %c0_44, %c0_45] : memref<2x8x128xf32, #tpu.memory_space<vmem>>, vector<1x8x128xf32>
    %119 = vector.shape_cast %118 : vector<1x8x128xf32> to vector<8x128xf32>
    %cst_46 = arith.constant 1.000000e+01 : f32
    %120 = vector.broadcast %cst_46 : f32 to vector<8x128xf32>
    %121 = arith.mulf %119, %120 : vector<8x128xf32>
    %cst_47 = arith.constant dense<0xFF800000> : vector<8xf32>
    %122 = vector.multi_reduction <maximumf>, %121, %cst_47 [1] : vector<8x128xf32> to vector<8xf32>
    %123 = vector.shape_cast %122 : vector<8xf32> to vector<8x1xf32>
    %124 = vector.broadcast %123 : vector<8x1xf32> to vector<8x128xf32>
    %125 = arith.subf %121, %124 : vector<8x128xf32>
    %126 = math.exp %125 : vector<8x128xf32>
    %cst_48 = arith.constant 0.000000e+00 : f32
    %127 = vector.broadcast %cst_48 : f32 to vector<8x128xf32>
    %128 = arith.subf %127, %15 : vector<8x128xf32>
    %129 = arith.mulf %126, %128 : vector<8x128xf32>
    %cst_49 = arith.constant dense<0.000000e+00> : vector<8xf32>
    %130 = vector.multi_reduction <add>, %129, %cst_49 [1] : vector<8x128xf32> to vector<8xf32>
    %131 = vector.shape_cast %130 : vector<8xf32> to vector<8x1xf32>
    %cst_50 = arith.constant dense<0.000000e+00> : vector<8xf32>
    %132 = vector.multi_reduction <add>, %126, %cst_50 [1] : vector<8x128xf32> to vector<8xf32>
    %133 = vector.shape_cast %132 : vector<8xf32> to vector<8x1xf32>
    %134 = tpu.reciprocal %133 : vector<8x1xf32> -> vector<8x1xf32>
    %135 = arith.mulf %131, %134 : vector<8x1xf32>
    %136 = vector.shape_cast %135 : vector<8x1xf32> to vector<1x8x1xf32>
    %cst_51 = arith.constant dense<0.000000e+00> : vector<1xf32>
    %137 = vector.multi_reduction <add>, %136, %cst_51 [1, 2] : vector<1x8x1xf32> to vector<1xf32>
    %138 = vector.shape_cast %137 : vector<1xf32> to vector<1x1x1xf32>
    %139 = vector.extract %138[0, 0, 0] : f32 from vector<1x1x1xf32>
    %140 = arith.addf %117, %139 : f32
    %c1_52 = arith.constant 1 : index
    %c0_53 = arith.constant 0 : index
    %c0_54 = arith.constant 0 : index
    %141 = vector.load %arg6[%c1_52, %c0_53, %c0_54] : memref<2x8x128xf32, #tpu.memory_space<vmem>>, vector<1x8x128xf32>
    %142 = vector.shape_cast %141 : vector<1x8x128xf32> to vector<8x128xf32>
    %cst_55 = arith.constant 1.000000e+01 : f32
    %143 = vector.broadcast %cst_55 : f32 to vector<8x128xf32>
    %144 = arith.mulf %142, %143 : vector<8x128xf32>
    %cst_56 = arith.constant dense<0xFF800000> : vector<8xf32>
    %145 = vector.multi_reduction <maximumf>, %144, %cst_56 [1] : vector<8x128xf32> to vector<8xf32>
    %146 = vector.shape_cast %145 : vector<8xf32> to vector<8x1xf32>
    %147 = vector.broadcast %146 : vector<8x1xf32> to vector<8x128xf32>
    %148 = arith.subf %144, %147 : vector<8x128xf32>
    %149 = math.exp %148 : vector<8x128xf32>
    %cst_57 = arith.constant 0.000000e+00 : f32
    %150 = vector.broadcast %cst_57 : f32 to vector<8x128xf32>
    %151 = arith.subf %150, %28 : vector<8x128xf32>
    %152 = arith.mulf %149, %151 : vector<8x128xf32>
    %cst_58 = arith.constant dense<0.000000e+00> : vector<8xf32>
    %153 = vector.multi_reduction <add>, %152, %cst_58 [1] : vector<8x128xf32> to vector<8xf32>
    %154 = vector.shape_cast %153 : vector<8xf32> to vector<8x1xf32>
    %cst_59 = arith.constant dense<0.000000e+00> : vector<8xf32>
    %155 = vector.multi_reduction <add>, %149, %cst_59 [1] : vector<8x128xf32> to vector<8xf32>
    %156 = vector.shape_cast %155 : vector<8xf32> to vector<8x1xf32>
    %157 = tpu.reciprocal %156 : vector<8x1xf32> -> vector<8x1xf32>
    %158 = arith.mulf %154, %157 : vector<8x1xf32>
    %159 = vector.shape_cast %158 : vector<8x1xf32> to vector<1x8x1xf32>
    %cst_60 = arith.constant dense<0.000000e+00> : vector<1xf32>
    %160 = vector.multi_reduction <add>, %159, %cst_60 [1, 2] : vector<1x8x1xf32> to vector<1xf32>
    %161 = vector.shape_cast %160 : vector<1xf32> to vector<1x1x1xf32>
    %162 = vector.extract %161[0, 0, 0] : f32 from vector<1x1x1xf32>
    %163 = arith.addf %140, %162 : f32
    %c0_61 = arith.constant 0 : index
    %164 = memref.load %arg8[%c0_61] : memref<2xf32, #tpu.memory_space<smem>>
    %165 = arith.addf %164, %71 : f32
    %c0_62 = arith.constant 0 : index
    %166 = memref.load %arg8[%c0_62] : memref<2xf32, #tpu.memory_space<smem>>
    memref.store %165, %arg8[%c0_62] : memref<2xf32, #tpu.memory_space<smem>>
    %c1_63 = arith.constant 1 : index
    %167 = memref.load %arg8[%c1_63] : memref<2xf32, #tpu.memory_space<smem>>
    %168 = arith.addf %167, %163 : f32
    %c1_64 = arith.constant 1 : index
    %169 = memref.load %arg8[%c1_64] : memref<2xf32, #tpu.memory_space<smem>>
    memref.store %168, %arg8[%c1_64] : memref<2xf32, #tpu.memory_space<smem>>
    %c0_i32_65 = arith.constant 0 : i32
    %170 = arith.cmpi eq, %arg0, %c0_i32_65 : i32
    %171 = arith.extui %170 : i1 to i32
    %c0_i32_66 = arith.constant 0 : i32
    %172 = arith.cmpi ne, %171, %c0_i32_66 : i32
    scf.if %172 {
      %c0_67 = arith.constant 0 : index
      %173 = memref.load %arg8[%c0_67] : memref<2xf32, #tpu.memory_space<smem>>
      %cst_68 = arith.constant 1.600000e+01 : f32
      %174 = arith.divf %173, %cst_68 : f32
      %c1_69 = arith.constant 1 : index
      %175 = memref.load %arg8[%c1_69] : memref<2xf32, #tpu.memory_space<smem>>
      %cst_70 = arith.constant 3.200000e+01 : f32
      %176 = arith.divf %175, %cst_70 : f32
      %177 = arith.addf %174, %176 : f32
      %cst_71 = arith.constant 5.000000e-01 : f32
      %178 = arith.mulf %177, %cst_71 : f32
      %c0_72 = arith.constant 0 : index
      %c0_73 = arith.constant 0 : index
      %179 = memref.load %arg7[%c0_72, %c0_73] : memref<1x1xf32, #tpu.memory_space<smem>>
      memref.store %178, %arg7[%c0_72, %c0_73] : memref<1x1xf32, #tpu.memory_space<smem>>
    } else {
    }
    return
  }
  func.func @transform_0(%arg0: i32) -> (i32, i32) {
    %c0_i32 = arith.constant 0 : i32
    %c0_i32_0 = arith.constant 0 : i32
    return %arg0, %c0_i32 : i32, i32
  }
  func.func @transform_1(%arg0: i32) -> (i32, i32) {
    %c1_i32 = arith.constant 1 : i32
    %0 = arith.addi %arg0, %c1_i32 : i32
    %c0_i32 = arith.constant 0 : i32
    %c0_i32_0 = arith.constant 0 : i32
    return %0, %c0_i32 : i32, i32
  }
  func.func @transform_2(%arg0: i32) -> (i32, i32) {
    %c0_i32 = arith.constant 0 : i32
    %c0_i32_0 = arith.constant 0 : i32
    return %arg0, %c0_i32 : i32, i32
  }
  func.func @transform_3(%arg0: i32) -> (i32, i32) {
    %c1_i32 = arith.constant 1 : i32
    %0 = arith.addi %arg0, %c1_i32 : i32
    %c0_i32 = arith.constant 0 : i32
    %c0_i32_0 = arith.constant 0 : i32
    return %0, %c0_i32 : i32, i32
  }
  func.func @transform_4(%arg0: i32) -> (i32, i32, i32) {
    %c0_i32 = arith.constant 0 : i32
    %c0_i32_0 = arith.constant 0 : i32
    %c0_i32_1 = arith.constant 0 : i32
    return %c0_i32, %arg0, %c0_i32_0 : i32, i32, i32
  }
  func.func @transform_5(%arg0: i32) -> (i32, i32, i32) {
    %c1_i32 = arith.constant 1 : i32
    %0 = arith.addi %arg0, %c1_i32 : i32
    %c0_i32 = arith.constant 0 : i32
    %c0_i32_0 = arith.constant 0 : i32
    %c0_i32_1 = arith.constant 0 : i32
    return %c0_i32, %0, %c0_i32_0 : i32, i32, i32
  }
  func.func @transform_6(%arg0: i32) -> (i32, i32) {
    %c0_i32 = arith.constant 0 : i32
    %c0_i32_0 = arith.constant 0 : i32
    %c0_i32_1 = arith.constant 0 : i32
    return %c0_i32, %c0_i32_0 : i32, i32
  }
}

</mosaic_0001>

<bundles_post_ra>
// kernel: tpu_custom_call.1
= control target key start
LH: loop header
LB: loop body
LE: loop exit
PB: predicated region body
PF: predicated region fallthrough
CT: control target
= control target key end

     0   :  { %11 = vsyncpa [#allocation4], 0  ;;  %s700_s0 = inlined_call_operand.hbm [shape: f32[16,128], index: 0, kind: input, shape index: {}]   ;;  %s701_s1 = inlined_call_operand.hbm [shape: f32[16,128], index: 1, kind: input, shape index: {}]   ;;  %s702_s2 = inlined_call_operand.hbm [shape: f32[16,128], index: 2, kind: input, shape index: {}]   ;;  %s703_s3 = inlined_call_operand.hbm [shape: f32[16,128], index: 3, kind: input, shape index: {}]   ;;  %s704_s4 = inlined_call_operand.hbm [shape: f32[2,16,128], index: 4, kind: input, shape index: {}]   ;;  %s705_s5 = inlined_call_operand.hbm [shape: f32[2,16,128], index: 5, kind: input, shape index: {}]   ;;  %s706_s6 = inlined_call_operand.hbm [shape: f32[1,1], index: 6, kind: output, shape index: {}]  }
   0x1   :  { %12 = vsyncpa [#allocation7], 0 }
   0x2   :  { %13 = vsyncpa [#allocation10], 0 }
   0x3   :  { %14 = vsyncpa [#allocation13], 0  ;;  %s336_s23 = scalar_lea.hbm %s701_s1, 128 }
   0x4   :  { %15 = vsyncpa [#allocation5], 0  ;;  %s556_s24 = smov [#allocation6]   ;;  %s607_s28 = scalar_lea.hbm %s703_s3, 128 }
   0x5   :  { %s35_s25 = sshll.u32 %s556_s24, 4  ;;  %s419_s7 = scalar_lea.hbm %s701_s1, 256  ;;  %s36_s25 = int_to_ptr.vmem [resolvable:$true] %s35_s25 }
   0x6   :  { %p396_p0 = scmp.ne.s32.totalorder %s336_s23, %s419_s7  ;;  %p398_p1 = scmp.lt.u32.totalorder %s336_s23, %s701_s1 }
   0x7   :  { %p399_p2 = scmp.lt.u32.totalorder %s419_s7, %s419_s7  ;;  %p401_p4 = scmp.lt.u32.totalorder %s419_s7, %s336_s23 }
   0x9   :  { %p400_p3 = por %p399_p2, %p398_p1 }
   0xb   :  { %p402_p5 = por %p401_p4, %p400_p3 }
   0xd   :  { %p403_p6 = pnand %p402_p5, %p396_p0 }
   0xf   :  { %406 = shalt.err (!%p403_p6)
}
  0x10   :  { %s407_s10 = scalar_lea.vmem %s36_s25, 128  ;;  %p412_p8 = scmp.lt.s32.totalorder %s36_s25, %s36_s25 }
  0x11   :  { %p408_p7 = scmp.ne.s32.totalorder %s36_s25, %s407_s10  ;;  %p413_p9 = scmp.lt.s32.totalorder %s407_s10, %s407_s10 }
  0x13   :  { %p414_p10 = por %p413_p9, %p412_p8 }
  0x15   :  { %p415_p11 = pnand %p414_p10, %p408_p7 }
  0x17   :  { %418 = shalt.err (!%p415_p11)
}
  0x18   :  { %38 = dma.hbm_to_vmem [thread:$0]  %s336_s23, 128, %s36_s25, [#allocation7]  }
  0x19   :  { %s557_s11 = smov [#allocation9]   ;;  %s558_s1 = smov [#allocation3]  }
  0x1a   :  { %s58_s12 = sshll.u32 %s557_s11, 4  ;;  %s22_s13 = sshll.u32 %s558_s1, 4  ;;  %s59_s12 = int_to_ptr.vmem [resolvable:$true] %s58_s12  ;;  %s23_s13 = int_to_ptr.vmem [resolvable:$true] %s22_s13 }
  0x1b   :  { %s444_s16 = scalar_lea.hbm %s703_s3, 256  ;;  %p423_p13 = scmp.lt.u32.totalorder %s607_s28, %s703_s3 }
  0x1c   :  { %p421_p12 = scmp.ne.s32.totalorder %s607_s28, %s444_s16  ;;  %p424_p0 = scmp.lt.u32.totalorder %s444_s16, %s444_s16 }
  0x1d   :  { %p426_p2 = scmp.lt.u32.totalorder %s444_s16, %s607_s28 }
  0x1e   :  { %p425_p1 = por %p424_p0, %p423_p13 }
  0x20   :  { %p427_p3 = por %p426_p2, %p425_p1 }
  0x22   :  { %p428_p4 = pnand %p427_p3, %p421_p12 }
  0x24   :  { %431 = shalt.err (!%p428_p4)
}
  0x25   :  { %s432_s19 = scalar_lea.vmem %s59_s12, 128  ;;  %p437_p6 = scmp.lt.s32.totalorder %s59_s12, %s59_s12 }
  0x26   :  { %p433_p5 = scmp.ne.s32.totalorder %s59_s12, %s432_s19  ;;  %p438_p7 = scmp.lt.s32.totalorder %s432_s19, %s432_s19 }
  0x28   :  { %p439_p8 = por %p438_p7, %p437_p6 }
  0x2a   :  { %p440_p9 = pnand %p439_p8, %p433_p5 }
  0x2c   :  { %443 = shalt.err (!%p440_p9)
}
  0x2d   :  { %61 = dma.hbm_to_vmem [thread:$0]  %s607_s28, 128, %s59_s12, [#allocation10]  }
  0x2e   :  { %s445_s3 = scalar_lea.hbm %s700_s0, 128  ;;  %s447_s26 = scalar_lea.hbm %s700_s0, 256 }
  0x2f   :  { %p446_p10 = scmp.ne.s32.totalorder %s700_s0, %s445_s3  ;;  %p448_p11 = scmp.lt.u32.totalorder %s447_s26, %s445_s3 }
  0x30   :  { %p449_p12 = scmp.lt.u32.totalorder %s445_s3, %s700_s0 }
  0x32   :  { %p450_p13 = por %p449_p12, %p448_p11 }
  0x34   :  { %p451_p0 = pnand %p450_p13, %p446_p10 }
  0x36   :  { %454 = shalt.err (!%p451_p0)
}
  0x37   :  { %s455_s28 = scalar_lea.vmem %s23_s13, 128  ;;  %p460_p2 = scmp.lt.s32.totalorder %s23_s13, %s23_s13 }
  0x38   :  { %p456_p1 = scmp.ne.s32.totalorder %s23_s13, %s455_s28  ;;  %p461_p3 = scmp.lt.s32.totalorder %s455_s28, %s455_s28 }
  0x3a   :  { %p462_p4 = por %p461_p3, %p460_p2 }
  0x3c   :  { %p463_p5 = pnand %p462_p4, %p456_p1 }
  0x3e   :  { %466 = shalt.err (!%p463_p5)
}
  0x3f   :  { %25 = dma.hbm_to_vmem [thread:$0]  %s700_s0, 128, %s23_s13, [#allocation4]  }
  0x40   :  { %s559_s8 = smov [#allocation8]   ;;  %s560_s10 = smov [#allocation11]  }
  0x41   :  { %s45_s9 = sshll.u32 %s559_s8, 4  ;;  %s67_s11 = sshll.u32 %s560_s10, 4  ;;  %s46_s9 = int_to_ptr.vmem [resolvable:$true] %s45_s9  ;;  %s68_s11 = int_to_ptr.vmem [resolvable:$true] %s67_s11 }
  0x42   :  { %s467_s14 = scalar_lea.hbm %s702_s2, 128  ;;  %s469_s19 = scalar_lea.hbm %s702_s2, 256 }
  0x43   :  { %p468_p6 = scmp.ne.s32.totalorder %s702_s2, %s467_s14  ;;  %p470_p7 = scmp.lt.u32.totalorder %s469_s19, %s467_s14 }
  0x44   :  { %p471_p8 = scmp.lt.u32.totalorder %s467_s14, %s702_s2 }
  0x46   :  { %p472_p9 = por %p471_p8, %p470_p7 }
  0x48   :  { %p473_p10 = pnand %p472_p9, %p468_p6 }
  0x4a   :  { %476 = shalt.err (!%p473_p10)
}
  0x4b   :  { %s477_s13 = scalar_lea.vmem %s46_s9, 128  ;;  %p482_p12 = scmp.lt.s32.totalorder %s46_s9, %s46_s9 }
  0x4c   :  { %p478_p11 = scmp.ne.s32.totalorder %s46_s9, %s477_s13  ;;  %p483_p13 = scmp.lt.s32.totalorder %s477_s13, %s477_s13 }
  0x4e   :  { %p484_p0 = por %p483_p13, %p482_p12 }
  0x50   :  { %p485_p1 = pnand %p484_p0, %p478_p11 }
  0x52   :  { %488 = shalt.err (!%p485_p1)
}
  0x53   :  { %48 = dma.hbm_to_vmem [thread:$0]  %s702_s2, 128, %s46_s9, [#allocation7]  }
  0x54   :  { %s489_s24 = scalar_lea.hbm %s704_s4, 256  ;;  %s491_s28 = scalar_lea.hbm %s704_s4, 512 }
  0x55   :  { %p490_p2 = scmp.ne.s32.totalorder %s704_s4, %s489_s24  ;;  %p492_p3 = scmp.lt.u32.totalorder %s491_s28, %s489_s24 }
  0x56   :  { %p493_p4 = scmp.lt.u32.totalorder %s489_s24, %s704_s4 }
  0x58   :  { %p494_p5 = por %p493_p4, %p492_p3 }
  0x5a   :  { %p495_p6 = pnand %p494_p5, %p490_p2 }
  0x5c   :  { %498 = shalt.err (!%p495_p6)
}
  0x5d   :  { %s499_s2 = scalar_lea.vmem %s68_s11, 256  ;;  %p504_p8 = scmp.lt.s32.totalorder %s68_s11, %s68_s11 }
  0x5e   :  { %p500_p7 = scmp.ne.s32.totalorder %s68_s11, %s499_s2  ;;  %p505_p9 = scmp.lt.s32.totalorder %s499_s2, %s499_s2 }
  0x60   :  { %p506_p10 = por %p505_p9, %p504_p8 }
  0x62   :  { %p507_p11 = pnand %p506_p10, %p500_p7 }
  0x64   :  { %510 = shalt.err (!%p507_p11)
}
  0x65   :  { %s561_s8 = smov 256   ;;  %s562_s9 = smov 128  }
  0x66   :  { %s563_s10 = smov 8   ;;  %s338_s16 = scalar_lea.hbm %s705_s5, 128 }
  0x67   :  { %73 = dma.hbm_to_vmem [thread:$0]  %s704_s4, 256, %s68_s11, [#allocation10], %s561_s8, %s562_s9, %s563_s10  }
  0x68   :  { %s564_s17 = smov [#allocation12]   ;;  %s535_s0 = scalar_lea.hbm %s705_s5, 384 }
  0x69   :  { %s82_s18 = sshll.u32 %s564_s17, 4  ;;  %p512_p12 = scmp.ne.s32.totalorder %s338_s16, %s535_s0  ;;  %s83_s18 = int_to_ptr.vmem [resolvable:$true] %s82_s18 }
  0x6a   :  { %s513_s3 = scalar_lea.hbm %s705_s5, 512  ;;  %p514_p13 = scmp.lt.u32.totalorder %s338_s16, %s705_s5 }
  0x6b   :  { %p515_p0 = scmp.lt.u32.totalorder %s513_s3, %s535_s0  ;;  %p517_p2 = scmp.lt.u32.totalorder %s535_s0, %s338_s16 }
  0x6d   :  { %p516_p1 = por %p515_p0, %p514_p13 }
  0x6f   :  { %p518_p3 = por %p517_p2, %p516_p1 }
  0x71   :  { %p519_p4 = pnand %p518_p3, %p512_p12 }
  0x73   :  { %522 = shalt.err (!%p519_p4)
}
  0x74   :  { %s523_s4 = scalar_lea.vmem %s83_s18, 256  ;;  %p528_p6 = scmp.lt.s32.totalorder %s83_s18, %s83_s18 }
  0x75   :  { %p524_p5 = scmp.ne.s32.totalorder %s83_s18, %s523_s4  ;;  %p529_p7 = scmp.lt.s32.totalorder %s523_s4, %s523_s4 }
  0x77   :  { %p530_p8 = por %p529_p7, %p528_p6 }
  0x79   :  { %p531_p9 = pnand %p530_p8, %p524_p5 }
  0x7b   :  { %534 = shalt.err (!%p531_p9)
}
  0x7c   :  { %88 = dma.hbm_to_vmem [thread:$0]  %s338_s16, 256, %s83_s18, [#allocation13], %s561_s8, %s562_s9, %s563_s10  }
  0x7d   :  { %546 = dma.done.wait [#allocation4], 128  }
  0x7e   :  { %547 = vsyncadd [#allocation4], 4294967168 }
  0x7f   :  { %548 = dma.done.wait [#allocation7], 256  }
  0x80   :  { %549 = vsyncadd [#allocation7], 4294967040 }
  0x81   :  { %550 = dma.done.wait [#allocation10], 384  }
  0x82   :  { %551 = vsyncadd [#allocation10], 4294966912 }
  0x83   :  { %552 = dma.done.wait [#allocation13], 256  }
  0x84   :  { %553 = vsyncadd [#allocation13], 4294967040  ;;  %v118_v0 = vld [vmem:[#allocation3] sm:$0xff]  ;;  %v130_v1 = vld [vmem:[#allocation6] sm:$0xff]  ;;  %vm157_vm0 = vcmask 7168   ;;  %s536_s14 = scalar_lea.hbm %s706_s6, 16 }
  0x85   :  { %v119_v2 = vmul.f32 10.0, %v118_v0  ;;  %v131_v3 = vmul.f32 10.0, %v130_v1  ;;  %v142_v4 = vld [vmem:[#allocation8] sm:$0xff]  ;;  %v168_v6 = vld [vmem:[#allocation9] sm:$0xff]  ;;  %v194_v7 = vld [vmem:[#allocation11] sm:$0xff]  ;;  %p537_p10 = scmp.ne.s32.totalorder %s706_s6, %s536_s14  ;;  %p540_p11 = scmp.lt.u32.totalorder %s536_s14, %s706_s6 }
  0x86   :  { %v143_v5 = vmul.f32 21.052631, %v142_v4  ;;  %v169_v8 = vmul.f32 21.052631, %v168_v6  ;;  %v195_v9 = vmul.f32 10.0, %v194_v7  ;;  %v219_v10 = vld [vmem:[#allocation12] sm:$0xff] }
  0x87   :  { %120 = vmax.xlane.f32.xlu0 %v119_v2  ;;  %v245_v11 = vld [vmem:[#allocation11 + $0x8] sm:$0xff]  ;;  %v271_v12 = vld [vmem:[#allocation12 + $0x8] sm:$0xff]  ;;  %v220_v13 = vmul.f32 10.0, %v219_v10  ;;  %p542_p12 = pnand %p540_p11, %p537_p10 }
  0x88   :  { %144 = vmax.xlane.f32.xlu1 %v143_v5  ;;  %v246_v14 = vmul.f32 10.0, %v245_v11  ;;  %v272_v15 = vmul.f32 10.0, %v271_v12 }
  0x8b   :  { %132 = vmax.xlane.f32.xlu0 %v131_v3 }
  0x8c   :  { %170 = vmax.xlane.f32.xlu1 %v169_v8 }
  0x8f   :  { %196 = vmax.xlane.f32.xlu0 %v195_v9 }
  0x90   :  { %221 = vmax.xlane.f32.xlu1 %v220_v13 }
  0x93   :  { %247 = vmax.xlane.f32.xlu0 %v246_v14 }
  0x94   :  { %273 = vmax.xlane.f32.xlu1 %v272_v15 }
 0x114   :  { %v121_v16 = vpop.xlane.xlu0 %120 }
 0x115   :  { %v122_v17 = vsub.f32 %v119_v2, %v121_v16  ;;  %v145_v23 = vpop.xlane.xlu1 %144 }
 0x116   :  { %v146_v24 = vsub.f32 %v143_v5, %v145_v23 }
 0x117   :  { %v123_v18 = vmul.f32 1.442695, %v122_v17 }
 0x118   :  { %v133_v19 = vpop.xlane.xlu0 %132  ;;  %v147_v26 = vmul.f32 1.442695, %v146_v24 }
 0x119   :  { %363 = vpow2.f32 %v123_v18  ;;  %v134_v20 = vsub.f32 %v131_v3, %v133_v19  ;;  %v171_v27 = vpop.xlane.xlu1 %170 }
 0x11a   :  { %v172_v29 = vsub.f32 %v169_v8, %v171_v27 }
 0x11b   :  { %v135_v21 = vmul.f32 1.442695, %v134_v20 }
 0x11c   :  { %v197_v28 = vpop.xlane.xlu0 %196  ;;  %v173_v31 = vmul.f32 1.442695, %v172_v29 }
 0x11d   :  { %365 = vpow2.f32 %v135_v21  ;;  %v198_v30 = vsub.f32 %v195_v9, %v197_v28  ;;  %v222_v33 = vpop.xlane.xlu1 %221 }
 0x11e   :  { %367 = vpow2.f32 %v147_v26  ;;  %v223_v35 = vsub.f32 %v220_v13, %v222_v33 }
 0x11f   :  { %v199_v32 = vmul.f32 1.442695, %v198_v30  ;;  %369 = vpow2.f32 %v173_v31 }
 0x120   :  { %v248_v34 = vpop.xlane.xlu0 %247  ;;  %v224_v37 = vmul.f32 1.442695, %v223_v35 }
 0x121   :  { %v249_v36 = vsub.f32 %v246_v14, %v248_v34  ;;  %371 = vpow2.f32 %v199_v32  ;;  %v274_v39 = vpop.xlane.xlu1 %273 }
 0x122   :  { %373 = vpow2.f32 %v224_v37  ;;  %v275_v40 = vsub.f32 %v272_v15, %v274_v39 }
 0x123   :  { %v364_v22 = vpop.eup %363  ;;  %v250_v38 = vmul.f32 1.442695, %v249_v36 }
 0x124   :  { %125 = vadd.xlane.f32.xlu0 %v364_v22  ;;  %v276_v42 = vmul.f32 1.442695, %v275_v40 }
 0x125   :  { %375 = vpow2.f32 %v250_v38 }
 0x126   :  { %377 = vpow2.f32 %v276_v42 }
 0x127   :  { %v366_v25 = vpop.eup %365 }
 0x128   :  { %137 = vadd.xlane.f32.xlu1 %v366_v25  ;;  %v368_v41 = vpop.eup %367 }
 0x129   :  { %153 = vadd.xlane.f32.xlu0 %v368_v41  ;;  %v370_v43 = vpop.eup %369 }
 0x12b   :  { %v372_v44 = vpop.eup %371 }
 0x12c   :  { %179 = vadd.xlane.f32.xlu1 %v370_v43  ;;  %v374_v45 = vpop.eup %373 }
 0x12d   :  { %204 = vadd.xlane.f32.xlu0 %v372_v44 }
 0x12f   :  { %v376_v46 = vpop.eup %375 }
 0x130   :  { %229 = vadd.xlane.f32.xlu1 %v374_v45  ;;  %v378_v47 = vpop.eup %377 }
 0x131   :  { %255 = vadd.xlane.f32.xlu0 %v376_v46 }
 0x134   :  { %281 = vadd.xlane.f32.xlu1 %v378_v47 }
 0x1b1   :  { %v126_v48 = vpop.xlane.xlu0 %125 }
 0x1b2   :  { %379 = vlog2.f32 %v126_v48 }
 0x1b5   :  { %v138_v49 = vpop.xlane.xlu1 %137 }
 0x1b6   :  { %381 = vlog2.f32 %v138_v49  ;;  %v154_v2 = vpop.xlane.xlu0 %153 }
 0x1b9   :  { %v180_v0 = vpop.xlane.xlu1 %179 }
 0x1ba   :  { %383 = vrcp.f32 %v180_v0  ;;  %v205_v3 = vpop.xlane.xlu0 %204 }
 0x1bc   :  { %v380_v50 = vpop.eup %379 }
 0x1bd   :  { %v128_v51 = vmul.f32 0.6931472, %v380_v50  ;;  %v230_v1 = vpop.xlane.xlu1 %229 }
 0x1be   :  { %385 = vrcp.f32 %v230_v1  ;;  %v256_v6 = vpop.xlane.xlu0 %255 }
 0x1bf   :  { %v129_v52 = vsub.f32 %v122_v17, %v128_v51  ;;  %387 = vrcp.f32 %v154_v2 }
 0x1c0   :  { %v382_v53 = vpop.eup %381 }
 0x1c1   :  { %v175_v54 = vsub.f32 0.0, %v129_v52  ;;  %v140_v55 = vmul.f32 0.6931472, %v382_v53  ;;  %v282_v4 = vpop.xlane.xlu1 %281 }
 0x1c2   :  { %389 = vrcp.f32 %v282_v4 }
 0x1c3   :  { %v141_v56 = vsub.f32 %v134_v20, %v140_v55  ;;  %v176_v57 = vmul.f32 %v370_v43, %v175_v54  ;;  %v201_v61 = vmul.f32 %v372_v44, %v175_v54  ;;  %v252_v63 = vmul.f32 %v376_v46, %v175_v54 }
 0x1c4   :  { %v384_v5 = vpop.eup %383  ;;  %391 = vrcp.f32 %v205_v3 }
 0x1c5   :  { %v149_v58 = vsub.f32 0.0, %v141_v56  ;;  %177 = vadd.xlane.f32.xlu1 %v176_v57  ;;  %393 = vrcp.f32 %v256_v6 }
 0x1c7   :  { %v150_v59 = vmul.f32 %v368_v41, %v149_v58  ;;  %v226_v60 = vmul.f32 %v374_v45, %v149_v58  ;;  %v278_v62 = vmul.f32 %v378_v47, %v149_v58 }
 0x1c8   :  { %v386_v9 = vpop.eup %385 }
 0x1c9   :  { %151 = vadd.xlane.f32.xlu0 %v150_v59  ;;  %227 = vadd.xlane.f32.xlu1 %v226_v60  ;;  %v388_v11 = vpop.eup %387 }
 0x1cc   :  { %v390_v16 = vpop.eup %389 }
 0x1cd   :  { %202 = vadd.xlane.f32.xlu0 %v201_v61  ;;  %279 = vadd.xlane.f32.xlu1 %v278_v62 }
 0x1ce   :  { %v392_v19 = vpop.eup %391 }
 0x1cf   :  { %v394_v26 = vpop.eup %393 }
 0x1d1   :  { %253 = vadd.xlane.f32.xlu0 %v252_v63 }
 0x252   :  { %v178_v7 = vpop.xlane.xlu1 %177 }
 0x253   :  { %v182_v8 = vmul.f32 %v384_v5, %v178_v7 }
 0x255   :  { %v183_v10 = vsel %vm157_vm0, %v182_v8, 0.0 }
 0x256   :  { %184 = vadd.xlane.f32.xlu1 %v183_v10  ;;  %v228_v12 = vpop.xlane.xlu1 %227  ;;  %v152_v13 = vpop.xlane.xlu0 %151 }
 0x257   :  { %v232_v14 = vmul.f32 %v386_v9, %v228_v12  ;;  %v156_v15 = vmul.f32 %v388_v11, %v152_v13 }
 0x259   :  { %v233_v17 = vsel %vm157_vm0, %v232_v14, 0.0  ;;  %v158_v18 = vsel %vm157_vm0, %v156_v15, 0.0 }
 0x25a   :  { %234 = vadd.xlane.f32.xlu1 %v233_v17  ;;  %v280_v20 = vpop.xlane.xlu1 %279  ;;  %159 = vadd.xlane.f32.xlu0 %v158_v18  ;;  %v203_v21 = vpop.xlane.xlu0 %202 }
 0x25b   :  { %v284_v22 = vmul.f32 %v390_v16, %v280_v20  ;;  %v207_v23 = vmul.f32 %v392_v19, %v203_v21 }
 0x25d   :  { %v285_v24 = vsel %vm157_vm0, %v284_v22, 0.0  ;;  %v208_v25 = vsel %vm157_vm0, %v207_v23, 0.0 }
 0x25e   :  { %286 = vadd.xlane.f32.xlu1 %v285_v24  ;;  %209 = vadd.xlane.f32.xlu0 %v208_v25  ;;  %v254_v27 = vpop.xlane.xlu0 %253 }
 0x25f   :  { %v258_v28 = vmul.f32 %v394_v26, %v254_v27 }
 0x261   :  { %v259_v29 = vsel %vm157_vm0, %v258_v28, 0.0 }
 0x262   :  { %260 = vadd.xlane.f32.xlu0 %v259_v29 }
 0x2e3   :  { %v185_v30 = vpop.xlane.xlu1 %184 }
 0x2e4   :  { %v186_v31 = vrot.slane %v185_v30, 4 }
 0x2e6   :  { %v187_v32 = vadd.f32 %v186_v31, %v185_v30 }
 0x2e7   :  { %v235_v33 = vpop.xlane.xlu1 %234  ;;  %v160_v34 = vpop.xlane.xlu0 %159 }
 0x2e8   :  { %v188_v35 = vrot.slane %v187_v32, 2  ;;  %v236_v36 = vrot.slane %v235_v33, 4  ;;  %v161_v37 = vrot.slane %v160_v34, 4 }
 0x2ea   :  { %v237_v38 = vadd.f32 %v236_v36, %v235_v33  ;;  %v162_v39 = vadd.f32 %v161_v37, %v160_v34  ;;  %v189_v42 = vadd.f32 %v188_v35, %v187_v32 }
 0x2eb   :  { %v287_v40 = vpop.xlane.xlu1 %286  ;;  %v210_v41 = vpop.xlane.xlu0 %209 }
 0x2ec   :  { %v238_v43 = vrot.slane %v237_v38, 2  ;;  %v163_v44 = vrot.slane %v162_v39, 2  ;;  %v288_v45 = vrot.slane %v287_v40, 4  ;;  %v211_v46 = vrot.slane %v210_v41, 4 }
 0x2ed   :  { %v190_v51 = vrot.slane %v189_v42, 1 }
 0x2ee   :  { %v289_v47 = vadd.f32 %v288_v45, %v287_v40  ;;  %v212_v48 = vadd.f32 %v211_v46, %v210_v41  ;;  %v164_v49 = vadd.f32 %v163_v44, %v162_v39  ;;  %v239_v52 = vadd.f32 %v238_v43, %v237_v38 }
 0x2ef   :  { %v261_v50 = vpop.xlane.xlu0 %260  ;;  %v191_v61 = vadd.f32 %v190_v51, %v189_v42 }
 0x2f0   :  { %v290_v53 = vrot.slane %v289_v47, 2  ;;  %v213_v54 = vrot.slane %v212_v48, 2  ;;  %v262_v55 = vrot.slane %v261_v50, 4  ;;  %v165_v56 = vrot.slane %v164_v49, 1 }
 0x2f1   :  { %v240_v62 = vrot.slane %v239_v52, 1 }
 0x2f2   :  { %v263_v57 = vadd.f32 %v262_v55, %v261_v50  ;;  %v166_v58 = vadd.f32 %v165_v56, %v164_v49  ;;  %v214_v59 = vadd.f32 %v213_v54, %v212_v48  ;;  %v291_v60 = vadd.f32 %v290_v53, %v289_v47 }
 0x2f3   :  { %v241_v3 = vadd.f32 %v240_v62, %v239_v52 }
 0x2f4   :  { %v264_v63 = vrot.slane %v263_v57, 2  ;;  %341 = vpush %v166_v58  ;;  %v215_v0 = vrot.slane %v214_v59, 1  ;;  %v292_v4 = vrot.slane %v291_v60, 1 }
 0x2f5   :  { %343 = vpush %v191_v61 }
 0x2f6   :  { %v265_v1 = vadd.f32 %v264_v63, %v263_v57  ;;  %v216_v2 = vadd.f32 %v215_v0, %v214_v59  ;;  %v293_v7 = vadd.f32 %v292_v4, %v291_v60 }
 0x2f8   :  { %345 = vpush %v216_v2  ;;  %v266_v5 = vrot.slane %v265_v1, 1 }
 0x2f9   :  { %347 = vpush %v241_v3 }
 0x2fa   :  { %v267_v6 = vadd.f32 %v266_v5, %v265_v1 }
 0x2fc   :  { %349 = vpush %v267_v6 }
 0x2fd   :  { %351 = vpush %v293_v7 }
 0x325   :  { %s342_s5 = spop %341 }
 0x326   :  { %s344_s11 = spop %343 }
 0x327   :  { %s193_s27 = sadd.f32 %s344_s11, %s342_s5 }
 0x329   :  { %s346_s24 = spop %345  ;;  %s310_s2 = smul.f32 0.0625, %s193_s27 }
 0x32a   :  { %s348_s25 = spop %347 }
 0x32b   :  { %s243_s26 = sadd.f32 %s348_s25, %s346_s24 }
 0x32d   :  { %s350_s29 = spop %349 }
 0x32e   :  { %s269_s28 = sadd.f32 %s350_s29, %s243_s26  ;;  %s352_s30 = spop %351 }
 0x330   :  { %s295_s7 = sadd.f32 %s352_s30, %s269_s28 }
 0x332   :  { %s314_s8 = smul.f32 0.03125, %s295_s7 }
 0x334   :  { %s315_s9 = sadd.f32 %s314_s8, %s310_s2 }
 0x336   :  { %s316_s10 = smul.f32 0.5, %s315_s9 }
 0x338   :  { %318 = sst [smem:[#allocation14]] %s316_s10 }
 0x339   :  { %545 = shalt.err (!%p542_p12)
}
 0x33a   :  { %s565_s19 = smov [#allocation14]  }
 0x33b   :  { %326 = dma.smem_to_hbm %s565_s19, 16, %s706_s6, [#allocation5]  }
 0x33c   :  { %554 = dma.done.wait [#allocation5], 16  }
 0x33d   :  { %555 = vsyncadd [#allocation5], 4294967280 }
 0x33e   :  { %330 = sfence }
 0x33f   :  { %331 = vsyncpa [#allocation4], 1 }
 0x340   :  { %332 = vsyncpa [#allocation7], 1 }
 0x341   :  { %333 = vsyncpa [#allocation10], 1 }
 0x342   :  { %334 = vsyncpa [#allocation13], 1 }
 0x343   :  { %335 = vsyncpa [#allocation5], 1 }

</bundles_post_ra>
